<compile_context>
chip_gen: v7x
topology: tpu7x:2x2x1
jax: 0.10.0
libtpu: 0.0.40
codegen_flags: <defaults>
</compile_context>

<pallas_src>
import numpy as np
import jax
import jax.numpy as jnp
from jax.experimental import pallas as pl
from jax.experimental.pallas import tpu as pltpu

# Model hyperparameters (from the PyTorch module); batch/seq scaled down for the demo.
INPUT_SIZE = 26     # len(chars) 'a'..'z'
HIDDEN_SIZE = 18
BATCH = 8           # module default is 100; small batch for the example
SEQ_LEN = 8         # module default is 20; small seq for the example


def gru_kernel(x_ref, wih_ref, whh_ref, gib_ref, bhhn_ref, out_ref, hlast_ref):
    """Runs the full GRU over all T time steps for one batch block.

    x_ref:     (T, Bc, I)  one-hot inputs, time-major
    wih_ref:   (I, 3H)     fused input weights, column blocks [r | z | n]
    whh_ref:   (H, 3H)     fused hidden weights, column blocks [r | z | n]
    gib_ref:   (1, 3H)     bias folded into the hoisted input projection:
                           [b_ih_r + b_hh_r | b_ih_z + b_hh_z | b_ih_n]
    bhhn_ref:  (1, H)      b_hh_n (must stay inside r * (h @ Whh_n + b_hh_n))
    out_ref:   (T, Bc, H)  per-step hidden states (time-major)
    hlast_ref: (Bc, H)     final hidden state
    """
    T, Bc, I = x_ref.shape
    H = hlast_ref.shape[-1]

    # Hoisted + fused input projection for ALL time steps: one MXU matmul.
    x_all = x_ref[...].reshape(T * Bc, I)                                  # (T*Bc, I)
    gi_all = jnp.dot(x_all, wih_ref[...],
                     preferred_element_type=jnp.float32) + gib_ref[...]    # (T*Bc, 3H)

    whh = whh_ref[...]          # (H, 3H), stays resident across the loop
    bhh_n = bhhn_ref[...]       # (1, H)

    h = jnp.zeros((Bc, H), jnp.float32)       # init_hidden(): zeros
    for t in range(T):                        # static unroll; only h@Whh is serial
        gi = gi_all[t * Bc:(t + 1) * Bc, :]                                # (Bc, 3H)
        gh = jnp.dot(h, whh, preferred_element_type=jnp.float32)           # (Bc, 3H)
        r = jax.nn.sigmoid(gi[:, 0:H] + gh[:, 0:H])
        z = jax.nn.sigmoid(gi[:, H:2 * H] + gh[:, H:2 * H])
        n = jnp.tanh(gi[:, 2 * H:] + r * (gh[:, 2 * H:] + bhh_n))
        h = (1.0 - z) * n + z * h
        out_ref[t] = h
    hlast_ref[...] = h


def gru_forward(x_btI, w_ih, w_hh, b_ih, b_hh):
    """x_btI: (B, T, I) float32 one-hot (batch_first, like PyTorch).
    w_ih: (3, H, I), w_hh: (3, H, H), b_ih/b_hh: (3, H). Gate order r, z, n.
    Returns (output (B, T, H), hidden (B, H))."""
    B, T, I = x_btI.shape
    H = w_hh.shape[-1]

    # Time-major input so each step's (Bc, I) slab is contiguous in the kernel.
    x_tbI = jnp.transpose(x_btI, (1, 0, 2)).astype(jnp.float32)            # (T, B, I)

    # Fused gate weights, column blocks [r | z | n].
    wih_all = jnp.transpose(w_ih, (2, 0, 1)).reshape(I, 3 * H)             # (I, 3H)
    whh_all = jnp.transpose(w_hh, (2, 0, 1)).reshape(H, 3 * H)             # (H, 3H)

    # Pre-summed biases: r/z biases fold into the hoisted input projection;
    # b_hh_n stays separate (multiplied by r inside the recurrence).
    gi_bias = jnp.concatenate([b_ih[0] + b_hh[0],
                               b_ih[1] + b_hh[1],
                               b_ih[2]]).reshape(1, 3 * H)                 # (1, 3H)
    bhh_n = b_hh[2].reshape(1, H)                                          # (1, H)

    # Batch-block grid: lets v7x's second TensorCore run an independent batch shard
    # when B is large enough; a single block (grid=(1,)) at demo size.
    BB = B // 2 if (B % 16 == 0) else B
    nb = B // BB

    cost = pl.CostEstimate(
        flops=2 * T * B * 3 * H * (I + H) + 12 * T * B * H,
        transcendentals=3 * T * B * H,
        bytes_accessed=4 * (T * B * I + I * 3 * H + H * 3 * H + 4 * H
                            + T * B * H + B * H),
    )

    out_tbH, h_last = pl.pallas_call(
        gru_kernel,
        out_shape=(jax.ShapeDtypeStruct((T, B, H), jnp.float32),
                   jax.ShapeDtypeStruct((B, H), jnp.float32)),
        grid=(nb,),
        in_specs=[
            pl.BlockSpec((T, BB, I), lambda b: (0, b, 0)),     # x block (time-major)
            pl.BlockSpec((I, 3 * H), lambda b: (0, 0)),        # fused W_ih^T (resident)
            pl.BlockSpec((H, 3 * H), lambda b: (0, 0)),        # fused W_hh^T (resident)
            pl.BlockSpec((1, 3 * H), lambda b: (0, 0)),        # folded r/z/n input bias
            pl.BlockSpec((1, H), lambda b: (0, 0)),            # b_hh_n
        ],
        out_specs=(
            pl.BlockSpec((T, BB, H), lambda b: (0, b, 0)),     # output block (time-major)
            pl.BlockSpec((BB, H), lambda b: (b, 0)),           # final hidden block
        ),
        compiler_params=pltpu.CompilerParams(
            dimension_semantics=("parallel",)),                # batch blocks independent
        cost_estimate=cost,
    )(x_tbI, wih_all, whh_all, gi_bias, bhh_n)

    output = jnp.transpose(out_tbH, (1, 0, 2))   # back to (B, T, H), batch_first
    return output, h_last


def gru_reference(x, w_ih, w_hh, b_ih, b_hh):
    """Pure-JAX reference matching torch.nn.GRU semantics (zero initial hidden)."""
    B, T, I = x.shape
    H = w_hh.shape[-1]
    h = jnp.zeros((B, H), jnp.float32)
    outs = []
    for t in range(T):
        xt = x[:, t, :]
        r = jax.nn.sigmoid(xt @ w_ih[0].T + b_ih[0] + h @ w_hh[0].T + b_hh[0])
        z = jax.nn.sigmoid(xt @ w_ih[1].T + b_ih[1] + h @ w_hh[1].T + b_hh[1])
        n = jnp.tanh(xt @ w_ih[2].T + b_ih[2] + r * (h @ w_hh[2].T + b_hh[2]))
        h = (1.0 - z) * n + z * h
        outs.append(h)
    return jnp.stack(outs, axis=1), h


def make_onehot_input(key, batch, seq_len, input_size):
    """Mimics Model.init_data: right-aligned-reversed one-hot name encoding,
    but driven by deterministic random indices instead of real strings."""
    k1, k2 = jax.random.split(key)
    lengths = np.asarray(jax.random.randint(k1, (batch,), 1, seq_len + 1))
    idxs = np.asarray(jax.random.randint(k2, (batch, seq_len), 0, input_size))
    x = np.zeros((batch, seq_len, input_size), np.float32)
    for b in range(batch):
        for i in range(int(lengths[b])):
            x[b, seq_len - i - 1, int(idxs[b, i])] = 1.0
    return jnp.asarray(x)


if __name__ == "__main__":
    key = jax.random.PRNGKey(0)
    k_x, k_wih, k_whh, k_bih, k_bhh = jax.random.split(key, 5)

    # Deterministic parameter init (PyTorch-style U(-1/sqrt(H), 1/sqrt(H))).
    bound = 1.0 / np.sqrt(HIDDEN_SIZE)
    w_ih = jax.random.uniform(k_wih, (3, HIDDEN_SIZE, INPUT_SIZE),
                              jnp.float32, -bound, bound)
    w_hh = jax.random.uniform(k_whh, (3, HIDDEN_SIZE, HIDDEN_SIZE),
                              jnp.float32, -bound, bound)
    b_ih = jax.random.uniform(k_bih, (3, HIDDEN_SIZE), jnp.float32, -bound, bound)
    b_hh = jax.random.uniform(k_bhh, (3, HIDDEN_SIZE), jnp.float32, -bound, bound)

    x = make_onehot_input(k_x, BATCH, SEQ_LEN, INPUT_SIZE)  # (B, T, I) one-hot

    output, hidden = gru_forward(x, w_ih, w_hh, b_ih, b_hh)
    output = jax.block_until_ready(output)
    hidden = jax.block_until_ready(hidden)

    # Correctness check against the pure-JAX reference.
    out_ref, h_ref = gru_reference(x, w_ih, w_hh, b_ih, b_hh)
    np.testing.assert_allclose(np.asarray(output), np.asarray(out_ref),
                               rtol=1e-4, atol=1e-5)
    np.testing.assert_allclose(np.asarray(hidden), np.asarray(h_ref),
                               rtol=1e-4, atol=1e-5)

    assert output.shape == (BATCH, SEQ_LEN, HIDDEN_SIZE)
    assert hidden.shape == (BATCH, HIDDEN_SIZE)
    print("KERNEL_OK")
</pallas_src>

<mosaic_0001>
module attributes {stable_mosaic.version = 11 : i64} {
  func.func @gru_kernel(%arg0: i32, %arg1: memref<8x8x26xf32, #tpu.memory_space<vmem>>, %arg2: memref<26x54xf32, #tpu.memory_space<vmem>>, %arg3: memref<18x54xf32, #tpu.memory_space<vmem>>, %arg4: memref<1x54xf32, #tpu.memory_space<vmem>>, %arg5: memref<1x18xf32, #tpu.memory_space<vmem>>, %arg6: memref<8x8x18xf32, #tpu.memory_space<vmem>>, %arg7: memref<8x18xf32, #tpu.memory_space<vmem>>) attributes {dimension_semantics = [#tpu.dimension_semantics<parallel>], iteration_bounds = array<i64: 1>, scalar_prefetch = 0 : i64, scratch_operands = 0 : i64, tpu.core_type = #tpu.core_type<tc>, window_params = [{transform_indices = @transform_0, window_bounds = array<i64: 8, 8, 26>}, {pipeline_mode = #tpu.pipeline_mode<synchronous>, transform_indices = @transform_1, window_bounds = array<i64: 26, 54>}, {pipeline_mode = #tpu.pipeline_mode<synchronous>, transform_indices = @transform_2, window_bounds = array<i64: 18, 54>}, {pipeline_mode = #tpu.pipeline_mode<synchronous>, transform_indices = @transform_3, window_bounds = array<i64: 1, 54>}, {pipeline_mode = #tpu.pipeline_mode<synchronous>, transform_indices = @transform_4, window_bounds = array<i64: 1, 18>}, {transform_indices = @transform_5, window_bounds = array<i64: 8, 8, 18>}, {transform_indices = @transform_6, window_bounds = array<i64: 8, 18>}]} {
    %c0 = arith.constant 0 : index
    %c0_0 = arith.constant 0 : index
    %c0_1 = arith.constant 0 : index
    %0 = vector.load %arg1[%c0, %c0_0, %c0_1] : memref<8x8x26xf32, #tpu.memory_space<vmem>>, vector<8x8x26xf32>
    %1 = vector.shape_cast %0 : vector<8x8x26xf32> to vector<64x26xf32>
    %c0_2 = arith.constant 0 : index
    %c0_3 = arith.constant 0 : index
    %2 = vector.load %arg2[%c0_2, %c0_3] : memref<26x54xf32, #tpu.memory_space<vmem>>, vector<26x54xf32>
    %cst = arith.constant dense<0.000000e+00> : vector<64x54xf32>
    %3 = tpu.matmul %1, %2, %cst {dimension_numbers = #tpu.dot_dimension_numbers<[1], [0], [0], [1], [0, 0, 1, 1], [], []>} : vector<64x26xf32>, vector<26x54xf32>, vector<64x54xf32> -> vector<64x54xf32>
    %c0_4 = arith.constant 0 : index
    %c0_5 = arith.constant 0 : index
    %4 = vector.load %arg4[%c0_4, %c0_5] : memref<1x54xf32, #tpu.memory_space<vmem>>, vector<1x54xf32>
    %5 = vector.broadcast %4 : vector<1x54xf32> to vector<64x54xf32>
    %6 = arith.addf %3, %5 : vector<64x54xf32>
    %c0_6 = arith.constant 0 : index
    %c0_7 = arith.constant 0 : index
    %7 = vector.load %arg3[%c0_6, %c0_7] : memref<18x54xf32, #tpu.memory_space<vmem>>, vector<18x54xf32>
    %c0_8 = arith.constant 0 : index
    %c0_9 = arith.constant 0 : index
    %8 = vector.load %arg5[%c0_8, %c0_9] : memref<1x18xf32, #tpu.memory_space<vmem>>, vector<1x18xf32>
    %cst_10 = arith.constant 0.000000e+00 : f32
    %9 = vector.broadcast %cst_10 : f32 to vector<8x18xf32>
    %10 = vector.extract_strided_slice %6 {offsets = [0, 0], sizes = [8, 54], strides = [1, 1]} : vector<64x54xf32> to vector<8x54xf32>
    %cst_11 = arith.constant dense<0.000000e+00> : vector<8x54xf32>
    %11 = tpu.matmul %9, %7, %cst_11 {dimension_numbers = #tpu.dot_dimension_numbers<[1], [0], [0], [1], [0, 0, 1, 1], [], []>} : vector<8x18xf32>, vector<18x54xf32>, vector<8x54xf32> -> vector<8x54xf32>
    %12 = vector.extract_strided_slice %10 {offsets = [0, 0], sizes = [8, 18], strides = [1, 1]} : vector<8x54xf32> to vector<8x18xf32>
    %13 = vector.extract_strided_slice %11 {offsets = [0, 0], sizes = [8, 18], strides = [1, 1]} : vector<8x54xf32> to vector<8x18xf32>
    %14 = arith.addf %12, %13 : vector<8x18xf32>
    %15 = arith.negf %14 : vector<8x18xf32>
    %16 = math.exp %15 : vector<8x18xf32>
    %cst_12 = arith.constant 1.000000e+00 : f32
    %17 = vector.broadcast %cst_12 : f32 to vector<8x18xf32>
    %18 = arith.addf %17, %16 : vector<8x18xf32>
    %19 = arith.divf %17, %18 : vector<8x18xf32>
    %20 = vector.extract_strided_slice %10 {offsets = [0, 18], sizes = [8, 18], strides = [1, 1]} : vector<8x54xf32> to vector<8x18xf32>
    %21 = vector.extract_strided_slice %11 {offsets = [0, 18], sizes = [8, 18], strides = [1, 1]} : vector<8x54xf32> to vector<8x18xf32>
    %22 = arith.addf %20, %21 : vector<8x18xf32>
    %23 = arith.negf %22 : vector<8x18xf32>
    %24 = math.exp %23 : vector<8x18xf32>
    %cst_13 = arith.constant 1.000000e+00 : f32
    %25 = vector.broadcast %cst_13 : f32 to vector<8x18xf32>
    %26 = arith.addf %25, %24 : vector<8x18xf32>
    %27 = arith.divf %25, %26 : vector<8x18xf32>
    %28 = vector.extract_strided_slice %10 {offsets = [0, 36], sizes = [8, 18], strides = [1, 1]} : vector<8x54xf32> to vector<8x18xf32>
    %29 = vector.extract_strided_slice %11 {offsets = [0, 36], sizes = [8, 18], strides = [1, 1]} : vector<8x54xf32> to vector<8x18xf32>
    %30 = vector.broadcast %8 : vector<1x18xf32> to vector<8x18xf32>
    %31 = arith.addf %29, %30 : vector<8x18xf32>
    %32 = arith.mulf %19, %31 : vector<8x18xf32>
    %33 = arith.addf %28, %32 : vector<8x18xf32>
    %34 = math.tanh %33 : vector<8x18xf32>
    %cst_14 = arith.constant 1.000000e+00 : f32
    %35 = vector.broadcast %cst_14 : f32 to vector<8x18xf32>
    %36 = arith.subf %35, %27 : vector<8x18xf32>
    %37 = arith.mulf %36, %34 : vector<8x18xf32>
    %38 = arith.mulf %27, %9 : vector<8x18xf32>
    %39 = arith.addf %37, %38 : vector<8x18xf32>
    %c0_15 = arith.constant 0 : index
    %c0_16 = arith.constant 0 : index
    %c0_17 = arith.constant 0 : index
    %40 = vector.load %arg6[%c0_15, %c0_16, %c0_17] : memref<8x8x18xf32, #tpu.memory_space<vmem>>, vector<1x8x18xf32>
    %41 = vector.shape_cast %40 : vector<1x8x18xf32> to vector<8x18xf32>
    %42 = vector.shape_cast %39 : vector<8x18xf32> to vector<1x8x18xf32>
    tpu.vector_store %arg6[%c0_15, %c0_16, %c0_17], %42 {strides = array<i32>} : memref<8x8x18xf32, #tpu.memory_space<vmem>>, vector<1x8x18xf32>,
    %43 = vector.extract_strided_slice %6 {offsets = [8, 0], sizes = [8, 54], strides = [1, 1]} : vector<64x54xf32> to vector<8x54xf32>
    %cst_18 = arith.constant dense<0.000000e+00> : vector<8x54xf32>
    %44 = tpu.matmul %39, %7, %cst_18 {dimension_numbers = #tpu.dot_dimension_numbers<[1], [0], [0], [1], [0, 0, 1, 1], [], []>} : vector<8x18xf32>, vector<18x54xf32>, vector<8x54xf32> -> vector<8x54xf32>
    %45 = vector.extract_strided_slice %43 {offsets = [0, 0], sizes = [8, 18], strides = [1, 1]} : vector<8x54xf32> to vector<8x18xf32>
    %46 = vector.extract_strided_slice %44 {offsets = [0, 0], sizes = [8, 18], strides = [1, 1]} : vector<8x54xf32> to vector<8x18xf32>
    %47 = arith.addf %45, %46 : vector<8x18xf32>
    %48 = arith.negf %47 : vector<8x18xf32>
    %49 = math.exp %48 : vector<8x18xf32>
    %cst_19 = arith.constant 1.000000e+00 : f32
    %50 = vector.broadcast %cst_19 : f32 to vector<8x18xf32>
    %51 = arith.addf %50, %49 : vector<8x18xf32>
    %52 = arith.divf %50, %51 : vector<8x18xf32>
    %53 = vector.extract_strided_slice %43 {offsets = [0, 18], sizes = [8, 18], strides = [1, 1]} : vector<8x54xf32> to vector<8x18xf32>
    %54 = vector.extract_strided_slice %44 {offsets = [0, 18], sizes = [8, 18], strides = [1, 1]} : vector<8x54xf32> to vector<8x18xf32>
    %55 = arith.addf %53, %54 : vector<8x18xf32>
    %56 = arith.negf %55 : vector<8x18xf32>
    %57 = math.exp %56 : vector<8x18xf32>
    %cst_20 = arith.constant 1.000000e+00 : f32
    %58 = vector.broadcast %cst_20 : f32 to vector<8x18xf32>
    %59 = arith.addf %58, %57 : vector<8x18xf32>
    %60 = arith.divf %58, %59 : vector<8x18xf32>
    %61 = vector.extract_strided_slice %43 {offsets = [0, 36], sizes = [8, 18], strides = [1, 1]} : vector<8x54xf32> to vector<8x18xf32>
    %62 = vector.extract_strided_slice %44 {offsets = [0, 36], sizes = [8, 18], strides = [1, 1]} : vector<8x54xf32> to vector<8x18xf32>
    %63 = vector.broadcast %8 : vector<1x18xf32> to vector<8x18xf32>
    %64 = arith.addf %62, %63 : vector<8x18xf32>
    %65 = arith.mulf %52, %64 : vector<8x18xf32>
    %66 = arith.addf %61, %65 : vector<8x18xf32>
    %67 = math.tanh %66 : vector<8x18xf32>
    %cst_21 = arith.constant 1.000000e+00 : f32
    %68 = vector.broadcast %cst_21 : f32 to vector<8x18xf32>
    %69 = arith.subf %68, %60 : vector<8x18xf32>
    %70 = arith.mulf %69, %67 : vector<8x18xf32>
    %71 = arith.mulf %60, %39 : vector<8x18xf32>
    %72 = arith.addf %70, %71 : vector<8x18xf32>
    %c1 = arith.constant 1 : index
    %c0_22 = arith.constant 0 : index
    %c0_23 = arith.constant 0 : index
    %73 = vector.load %arg6[%c1, %c0_22, %c0_23] : memref<8x8x18xf32, #tpu.memory_space<vmem>>, vector<1x8x18xf32>
    %74 = vector.shape_cast %73 : vector<1x8x18xf32> to vector<8x18xf32>
    %75 = vector.shape_cast %72 : vector<8x18xf32> to vector<1x8x18xf32>
    tpu.vector_store %arg6[%c1, %c0_22, %c0_23], %75 {strides = array<i32>} : memref<8x8x18xf32, #tpu.memory_space<vmem>>, vector<1x8x18xf32>,
    %76 = vector.extract_strided_slice %6 {offsets = [16, 0], sizes = [8, 54], strides = [1, 1]} : vector<64x54xf32> to vector<8x54xf32>
    %cst_24 = arith.constant dense<0.000000e+00> : vector<8x54xf32>
    %77 = tpu.matmul %72, %7, %cst_24 {dimension_numbers = #tpu.dot_dimension_numbers<[1], [0], [0], [1], [0, 0, 1, 1], [], []>} : vector<8x18xf32>, vector<18x54xf32>, vector<8x54xf32> -> vector<8x54xf32>
    %78 = vector.extract_strided_slice %76 {offsets = [0, 0], sizes = [8, 18], strides = [1, 1]} : vector<8x54xf32> to vector<8x18xf32>
    %79 = vector.extract_strided_slice %77 {offsets = [0, 0], sizes = [8, 18], strides = [1, 1]} : vector<8x54xf32> to vector<8x18xf32>
    %80 = arith.addf %78, %79 : vector<8x18xf32>
    %81 = arith.negf %80 : vector<8x18xf32>
    %82 = math.exp %81 : vector<8x18xf32>
    %cst_25 = arith.constant 1.000000e+00 : f32
    %83 = vector.broadcast %cst_25 : f32 to vector<8x18xf32>
    %84 = arith.addf %83, %82 : vector<8x18xf32>
    %85 = arith.divf %83, %84 : vector<8x18xf32>
    %86 = vector.extract_strided_slice %76 {offsets = [0, 18], sizes = [8, 18], strides = [1, 1]} : vector<8x54xf32> to vector<8x18xf32>
    %87 = vector.extract_strided_slice %77 {offsets = [0, 18], sizes = [8, 18], strides = [1, 1]} : vector<8x54xf32> to vector<8x18xf32>
    %88 = arith.addf %86, %87 : vector<8x18xf32>
    %89 = arith.negf %88 : vector<8x18xf32>
    %90 = math.exp %89 : vector<8x18xf32>
    %cst_26 = arith.constant 1.000000e+00 : f32
    %91 = vector.broadcast %cst_26 : f32 to vector<8x18xf32>
    %92 = arith.addf %91, %90 : vector<8x18xf32>
    %93 = arith.divf %91, %92 : vector<8x18xf32>
    %94 = vector.extract_strided_slice %76 {offsets = [0, 36], sizes = [8, 18], strides = [1, 1]} : vector<8x54xf32> to vector<8x18xf32>
    %95 = vector.extract_strided_slice %77 {offsets = [0, 36], sizes = [8, 18], strides = [1, 1]} : vector<8x54xf32> to vector<8x18xf32>
    %96 = vector.broadcast %8 : vector<1x18xf32> to vector<8x18xf32>
    %97 = arith.addf %95, %96 : vector<8x18xf32>
    %98 = arith.mulf %85, %97 : vector<8x18xf32>
    %99 = arith.addf %94, %98 : vector<8x18xf32>
    %100 = math.tanh %99 : vector<8x18xf32>
    %cst_27 = arith.constant 1.000000e+00 : f32
    %101 = vector.broadcast %cst_27 : f32 to vector<8x18xf32>
    %102 = arith.subf %101, %93 : vector<8x18xf32>
    %103 = arith.mulf %102, %100 : vector<8x18xf32>
    %104 = arith.mulf %93, %72 : vector<8x18xf32>
    %105 = arith.addf %103, %104 : vector<8x18xf32>
    %c2 = arith.constant 2 : index
    %c0_28 = arith.constant 0 : index
    %c0_29 = arith.constant 0 : index
    %106 = vector.load %arg6[%c2, %c0_28, %c0_29] : memref<8x8x18xf32, #tpu.memory_space<vmem>>, vector<1x8x18xf32>
    %107 = vector.shape_cast %106 : vector<1x8x18xf32> to vector<8x18xf32>
    %108 = vector.shape_cast %105 : vector<8x18xf32> to vector<1x8x18xf32>
    tpu.vector_store %arg6[%c2, %c0_28, %c0_29], %108 {strides = array<i32>} : memref<8x8x18xf32, #tpu.memory_space<vmem>>, vector<1x8x18xf32>,
    %109 = vector.extract_strided_slice %6 {offsets = [24, 0], sizes = [8, 54], strides = [1, 1]} : vector<64x54xf32> to vector<8x54xf32>
    %cst_30 = arith.constant dense<0.000000e+00> : vector<8x54xf32>
    %110 = tpu.matmul %105, %7, %cst_30 {dimension_numbers = #tpu.dot_dimension_numbers<[1], [0], [0], [1], [0, 0, 1, 1], [], []>} : vector<8x18xf32>, vector<18x54xf32>, vector<8x54xf32> -> vector<8x54xf32>
    %111 = vector.extract_strided_slice %109 {offsets = [0, 0], sizes = [8, 18], strides = [1, 1]} : vector<8x54xf32> to vector<8x18xf32>
    %112 = vector.extract_strided_slice %110 {offsets = [0, 0], sizes = [8, 18], strides = [1, 1]} : vector<8x54xf32> to vector<8x18xf32>
    %113 = arith.addf %111, %112 : vector<8x18xf32>
    %114 = arith.negf %113 : vector<8x18xf32>
    %115 = math.exp %114 : vector<8x18xf32>
    %cst_31 = arith.constant 1.000000e+00 : f32
    %116 = vector.broadcast %cst_31 : f32 to vector<8x18xf32>
    %117 = arith.addf %116, %115 : vector<8x18xf32>
    %118 = arith.divf %116, %117 : vector<8x18xf32>
    %119 = vector.extract_strided_slice %109 {offsets = [0, 18], sizes = [8, 18], strides = [1, 1]} : vector<8x54xf32> to vector<8x18xf32>
    %120 = vector.extract_strided_slice %110 {offsets = [0, 18], sizes = [8, 18], strides = [1, 1]} : vector<8x54xf32> to vector<8x18xf32>
    %121 = arith.addf %119, %120 : vector<8x18xf32>
    %122 = arith.negf %121 : vector<8x18xf32>
    %123 = math.exp %122 : vector<8x18xf32>
    %cst_32 = arith.constant 1.000000e+00 : f32
    %124 = vector.broadcast %cst_32 : f32 to vector<8x18xf32>
    %125 = arith.addf %124, %123 : vector<8x18xf32>
    %126 = arith.divf %124, %125 : vector<8x18xf32>
    %127 = vector.extract_strided_slice %109 {offsets = [0, 36], sizes = [8, 18], strides = [1, 1]} : vector<8x54xf32> to vector<8x18xf32>
    %128 = vector.extract_strided_slice %110 {offsets = [0, 36], sizes = [8, 18], strides = [1, 1]} : vector<8x54xf32> to vector<8x18xf32>
    %129 = vector.broadcast %8 : vector<1x18xf32> to vector<8x18xf32>
    %130 = arith.addf %128, %129 : vector<8x18xf32>
    %131 = arith.mulf %118, %130 : vector<8x18xf32>
    %132 = arith.addf %127, %131 : vector<8x18xf32>
    %133 = math.tanh %132 : vector<8x18xf32>
    %cst_33 = arith.constant 1.000000e+00 : f32
    %134 = vector.broadcast %cst_33 : f32 to vector<8x18xf32>
    %135 = arith.subf %134, %126 : vector<8x18xf32>
    %136 = arith.mulf %135, %133 : vector<8x18xf32>
    %137 = arith.mulf %126, %105 : vector<8x18xf32>
    %138 = arith.addf %136, %137 : vector<8x18xf32>
    %c3 = arith.constant 3 : index
    %c0_34 = arith.constant 0 : index
    %c0_35 = arith.constant 0 : index
    %139 = vector.load %arg6[%c3, %c0_34, %c0_35] : memref<8x8x18xf32, #tpu.memory_space<vmem>>, vector<1x8x18xf32>
    %140 = vector.shape_cast %139 : vector<1x8x18xf32> to vector<8x18xf32>
    %141 = vector.shape_cast %138 : vector<8x18xf32> to vector<1x8x18xf32>
    tpu.vector_store %arg6[%c3, %c0_34, %c0_35], %141 {strides = array<i32>} : memref<8x8x18xf32, #tpu.memory_space<vmem>>, vector<1x8x18xf32>,
    %142 = vector.extract_strided_slice %6 {offsets = [32, 0], sizes = [8, 54], strides = [1, 1]} : vector<64x54xf32> to vector<8x54xf32>
    %cst_36 = arith.constant dense<0.000000e+00> : vector<8x54xf32>
    %143 = tpu.matmul %138, %7, %cst_36 {dimension_numbers = #tpu.dot_dimension_numbers<[1], [0], [0], [1], [0, 0, 1, 1], [], []>} : vector<8x18xf32>, vector<18x54xf32>, vector<8x54xf32> -> vector<8x54xf32>
    %144 = vector.extract_strided_slice %142 {offsets = [0, 0], sizes = [8, 18], strides = [1, 1]} : vector<8x54xf32> to vector<8x18xf32>
    %145 = vector.extract_strided_slice %143 {offsets = [0, 0], sizes = [8, 18], strides = [1, 1]} : vector<8x54xf32> to vector<8x18xf32>
    %146 = arith.addf %144, %145 : vector<8x18xf32>
    %147 = arith.negf %146 : vector<8x18xf32>
    %148 = math.exp %147 : vector<8x18xf32>
    %cst_37 = arith.constant 1.000000e+00 : f32
    %149 = vector.broadcast %cst_37 : f32 to vector<8x18xf32>
    %150 = arith.addf %149, %148 : vector<8x18xf32>
    %151 = arith.divf %149, %150 : vector<8x18xf32>
    %152 = vector.extract_strided_slice %142 {offsets = [0, 18], sizes = [8, 18], strides = [1, 1]} : vector<8x54xf32> to vector<8x18xf32>
    %153 = vector.extract_strided_slice %143 {offsets = [0, 18], sizes = [8, 18], strides = [1, 1]} : vector<8x54xf32> to vector<8x18xf32>
    %154 = arith.addf %152, %153 : vector<8x18xf32>
    %155 = arith.negf %154 : vector<8x18xf32>
    %156 = math.exp %155 : vector<8x18xf32>
    %cst_38 = arith.constant 1.000000e+00 : f32
    %157 = vector.broadcast %cst_38 : f32 to vector<8x18xf32>
    %158 = arith.addf %157, %156 : vector<8x18xf32>
    %159 = arith.divf %157, %158 : vector<8x18xf32>
    %160 = vector.extract_strided_slice %142 {offsets = [0, 36], sizes = [8, 18], strides = [1, 1]} : vector<8x54xf32> to vector<8x18xf32>
    %161 = vector.extract_strided_slice %143 {offsets = [0, 36], sizes = [8, 18], strides = [1, 1]} : vector<8x54xf32> to vector<8x18xf32>
    %162 = vector.broadcast %8 : vector<1x18xf32> to vector<8x18xf32>
    %163 = arith.addf %161, %162 : vector<8x18xf32>
    %164 = arith.mulf %151, %163 : vector<8x18xf32>
    %165 = arith.addf %160, %164 : vector<8x18xf32>
    %166 = math.tanh %165 : vector<8x18xf32>
    %cst_39 = arith.constant 1.000000e+00 : f32
    %167 = vector.broadcast %cst_39 : f32 to vector<8x18xf32>
    %168 = arith.subf %167, %159 : vector<8x18xf32>
    %169 = arith.mulf %168, %166 : vector<8x18xf32>
    %170 = arith.mulf %159, %138 : vector<8x18xf32>
    %171 = arith.addf %169, %170 : vector<8x18xf32>
    %c4 = arith.constant 4 : index
    %c0_40 = arith.constant 0 : index
    %c0_41 = arith.constant 0 : index
    %172 = vector.load %arg6[%c4, %c0_40, %c0_41] : memref<8x8x18xf32, #tpu.memory_space<vmem>>, vector<1x8x18xf32>
    %173 = vector.shape_cast %172 : vector<1x8x18xf32> to vector<8x18xf32>
    %174 = vector.shape_cast %171 : vector<8x18xf32> to vector<1x8x18xf32>
    tpu.vector_store %arg6[%c4, %c0_40, %c0_41], %174 {strides = array<i32>} : memref<8x8x18xf32, #tpu.memory_space<vmem>>, vector<1x8x18xf32>,
    %175 = vector.extract_strided_slice %6 {offsets = [40, 0], sizes = [8, 54], strides = [1, 1]} : vector<64x54xf32> to vector<8x54xf32>
    %cst_42 = arith.constant dense<0.000000e+00> : vector<8x54xf32>
    %176 = tpu.matmul %171, %7, %cst_42 {dimension_numbers = #tpu.dot_dimension_numbers<[1], [0], [0], [1], [0, 0, 1, 1], [], []>} : vector<8x18xf32>, vector<18x54xf32>, vector<8x54xf32> -> vector<8x54xf32>
    %177 = vector.extract_strided_slice %175 {offsets = [0, 0], sizes = [8, 18], strides = [1, 1]} : vector<8x54xf32> to vector<8x18xf32>
    %178 = vector.extract_strided_slice %176 {offsets = [0, 0], sizes = [8, 18], strides = [1, 1]} : vector<8x54xf32> to vector<8x18xf32>
    %179 = arith.addf %177, %178 : vector<8x18xf32>
    %180 = arith.negf %179 : vector<8x18xf32>
    %181 = math.exp %180 : vector<8x18xf32>
    %cst_43 = arith.constant 1.000000e+00 : f32
    %182 = vector.broadcast %cst_43 : f32 to vector<8x18xf32>
    %183 = arith.addf %182, %181 : vector<8x18xf32>
    %184 = arith.divf %182, %183 : vector<8x18xf32>
    %185 = vector.extract_strided_slice %175 {offsets = [0, 18], sizes = [8, 18], strides = [1, 1]} : vector<8x54xf32> to vector<8x18xf32>
    %186 = vector.extract_strided_slice %176 {offsets = [0, 18], sizes = [8, 18], strides = [1, 1]} : vector<8x54xf32> to vector<8x18xf32>
    %187 = arith.addf %185, %186 : vector<8x18xf32>
    %188 = arith.negf %187 : vector<8x18xf32>
    %189 = math.exp %188 : vector<8x18xf32>
    %cst_44 = arith.constant 1.000000e+00 : f32
    %190 = vector.broadcast %cst_44 : f32 to vector<8x18xf32>
    %191 = arith.addf %190, %189 : vector<8x18xf32>
    %192 = arith.divf %190, %191 : vector<8x18xf32>
    %193 = vector.extract_strided_slice %175 {offsets = [0, 36], sizes = [8, 18], strides = [1, 1]} : vector<8x54xf32> to vector<8x18xf32>
    %194 = vector.extract_strided_slice %176 {offsets = [0, 36], sizes = [8, 18], strides = [1, 1]} : vector<8x54xf32> to vector<8x18xf32>
    %195 = vector.broadcast %8 : vector<1x18xf32> to vector<8x18xf32>
    %196 = arith.addf %194, %195 : vector<8x18xf32>
    %197 = arith.mulf %184, %196 : vector<8x18xf32>
    %198 = arith.addf %193, %197 : vector<8x18xf32>
    %199 = math.tanh %198 : vector<8x18xf32>
    %cst_45 = arith.constant 1.000000e+00 : f32
    %200 = vector.broadcast %cst_45 : f32 to vector<8x18xf32>
    %201 = arith.subf %200, %192 : vector<8x18xf32>
    %202 = arith.mulf %201, %199 : vector<8x18xf32>
    %203 = arith.mulf %192, %171 : vector<8x18xf32>
    %204 = arith.addf %202, %203 : vector<8x18xf32>
    %c5 = arith.constant 5 : index
    %c0_46 = arith.constant 0 : index
    %c0_47 = arith.constant 0 : index
    %205 = vector.load %arg6[%c5, %c0_46, %c0_47] : memref<8x8x18xf32, #tpu.memory_space<vmem>>, vector<1x8x18xf32>
    %206 = vector.shape_cast %205 : vector<1x8x18xf32> to vector<8x18xf32>
    %207 = vector.shape_cast %204 : vector<8x18xf32> to vector<1x8x18xf32>
    tpu.vector_store %arg6[%c5, %c0_46, %c0_47], %207 {strides = array<i32>} : memref<8x8x18xf32, #tpu.memory_space<vmem>>, vector<1x8x18xf32>,
    %208 = vector.extract_strided_slice %6 {offsets = [48, 0], sizes = [8, 54], strides = [1, 1]} : vector<64x54xf32> to vector<8x54xf32>
    %cst_48 = arith.constant dense<0.000000e+00> : vector<8x54xf32>
    %209 = tpu.matmul %204, %7, %cst_48 {dimension_numbers = #tpu.dot_dimension_numbers<[1], [0], [0], [1], [0, 0, 1, 1], [], []>} : vector<8x18xf32>, vector<18x54xf32>, vector<8x54xf32> -> vector<8x54xf32>
    %210 = vector.extract_strided_slice %208 {offsets = [0, 0], sizes = [8, 18], strides = [1, 1]} : vector<8x54xf32> to vector<8x18xf32>
    %211 = vector.extract_strided_slice %209 {offsets = [0, 0], sizes = [8, 18], strides = [1, 1]} : vector<8x54xf32> to vector<8x18xf32>
    %212 = arith.addf %210, %211 : vector<8x18xf32>
    %213 = arith.negf %212 : vector<8x18xf32>
    %214 = math.exp %213 : vector<8x18xf32>
    %cst_49 = arith.constant 1.000000e+00 : f32
    %215 = vector.broadcast %cst_49 : f32 to vector<8x18xf32>
    %216 = arith.addf %215, %214 : vector<8x18xf32>
    %217 = arith.divf %215, %216 : vector<8x18xf32>
    %218 = vector.extract_strided_slice %208 {offsets = [0, 18], sizes = [8, 18], strides = [1, 1]} : vector<8x54xf32> to vector<8x18xf32>
    %219 = vector.extract_strided_slice %209 {offsets = [0, 18], sizes = [8, 18], strides = [1, 1]} : vector<8x54xf32> to vector<8x18xf32>
    %220 = arith.addf %218, %219 : vector<8x18xf32>
    %221 = arith.negf %220 : vector<8x18xf32>
    %222 = math.exp %221 : vector<8x18xf32>
    %cst_50 = arith.constant 1.000000e+00 : f32
    %223 = vector.broadcast %cst_50 : f32 to vector<8x18xf32>
    %224 = arith.addf %223, %222 : vector<8x18xf32>
    %225 = arith.divf %223, %224 : vector<8x18xf32>
    %226 = vector.extract_strided_slice %208 {offsets = [0, 36], sizes = [8, 18], strides = [1, 1]} : vector<8x54xf32> to vector<8x18xf32>
    %227 = vector.extract_strided_slice %209 {offsets = [0, 36], sizes = [8, 18], strides = [1, 1]} : vector<8x54xf32> to vector<8x18xf32>
    %228 = vector.broadcast %8 : vector<1x18xf32> to vector<8x18xf32>
    %229 = arith.addf %227, %228 : vector<8x18xf32>
    %230 = arith.mulf %217, %229 : vector<8x18xf32>
    %231 = arith.addf %226, %230 : vector<8x18xf32>
    %232 = math.tanh %231 : vector<8x18xf32>
    %cst_51 = arith.constant 1.000000e+00 : f32
    %233 = vector.broadcast %cst_51 : f32 to vector<8x18xf32>
    %234 = arith.subf %233, %225 : vector<8x18xf32>
    %235 = arith.mulf %234, %232 : vector<8x18xf32>
    %236 = arith.mulf %225, %204 : vector<8x18xf32>
    %237 = arith.addf %235, %236 : vector<8x18xf32>
    %c6 = arith.constant 6 : index
    %c0_52 = arith.constant 0 : index
    %c0_53 = arith.constant 0 : index
    %238 = vector.load %arg6[%c6, %c0_52, %c0_53] : memref<8x8x18xf32, #tpu.memory_space<vmem>>, vector<1x8x18xf32>
    %239 = vector.shape_cast %238 : vector<1x8x18xf32> to vector<8x18xf32>
    %240 = vector.shape_cast %237 : vector<8x18xf32> to vector<1x8x18xf32>
    tpu.vector_store %arg6[%c6, %c0_52, %c0_53], %240 {strides = array<i32>} : memref<8x8x18xf32, #tpu.memory_space<vmem>>, vector<1x8x18xf32>,
    %241 = vector.extract_strided_slice %6 {offsets = [56, 0], sizes = [8, 54], strides = [1, 1]} : vector<64x54xf32> to vector<8x54xf32>
    %cst_54 = arith.constant dense<0.000000e+00> : vector<8x54xf32>
    %242 = tpu.matmul %237, %7, %cst_54 {dimension_numbers = #tpu.dot_dimension_numbers<[1], [0], [0], [1], [0, 0, 1, 1], [], []>} : vector<8x18xf32>, vector<18x54xf32>, vector<8x54xf32> -> vector<8x54xf32>
    %243 = vector.extract_strided_slice %241 {offsets = [0, 0], sizes = [8, 18], strides = [1, 1]} : vector<8x54xf32> to vector<8x18xf32>
    %244 = vector.extract_strided_slice %242 {offsets = [0, 0], sizes = [8, 18], strides = [1, 1]} : vector<8x54xf32> to vector<8x18xf32>
    %245 = arith.addf %243, %244 : vector<8x18xf32>
    %246 = arith.negf %245 : vector<8x18xf32>
    %247 = math.exp %246 : vector<8x18xf32>
    %cst_55 = arith.constant 1.000000e+00 : f32
    %248 = vector.broadcast %cst_55 : f32 to vector<8x18xf32>
    %249 = arith.addf %248, %247 : vector<8x18xf32>
    %250 = arith.divf %248, %249 : vector<8x18xf32>
    %251 = vector.extract_strided_slice %241 {offsets = [0, 18], sizes = [8, 18], strides = [1, 1]} : vector<8x54xf32> to vector<8x18xf32>
    %252 = vector.extract_strided_slice %242 {offsets = [0, 18], sizes = [8, 18], strides = [1, 1]} : vector<8x54xf32> to vector<8x18xf32>
    %253 = arith.addf %251, %252 : vector<8x18xf32>
    %254 = arith.negf %253 : vector<8x18xf32>
    %255 = math.exp %254 : vector<8x18xf32>
    %cst_56 = arith.constant 1.000000e+00 : f32
    %256 = vector.broadcast %cst_56 : f32 to vector<8x18xf32>
    %257 = arith.addf %256, %255 : vector<8x18xf32>
    %258 = arith.divf %256, %257 : vector<8x18xf32>
    %259 = vector.extract_strided_slice %241 {offsets = [0, 36], sizes = [8, 18], strides = [1, 1]} : vector<8x54xf32> to vector<8x18xf32>
    %260 = vector.extract_strided_slice %242 {offsets = [0, 36], sizes = [8, 18], strides = [1, 1]} : vector<8x54xf32> to vector<8x18xf32>
    %261 = vector.broadcast %8 : vector<1x18xf32> to vector<8x18xf32>
    %262 = arith.addf %260, %261 : vector<8x18xf32>
    %263 = arith.mulf %250, %262 : vector<8x18xf32>
    %264 = arith.addf %259, %263 : vector<8x18xf32>
    %265 = math.tanh %264 : vector<8x18xf32>
    %cst_57 = arith.constant 1.000000e+00 : f32
    %266 = vector.broadcast %cst_57 : f32 to vector<8x18xf32>
    %267 = arith.subf %266, %258 : vector<8x18xf32>
    %268 = arith.mulf %267, %265 : vector<8x18xf32>
    %269 = arith.mulf %258, %237 : vector<8x18xf32>
    %270 = arith.addf %268, %269 : vector<8x18xf32>
    %c7 = arith.constant 7 : index
    %c0_58 = arith.constant 0 : index
    %c0_59 = arith.constant 0 : index
    %271 = vector.load %arg6[%c7, %c0_58, %c0_59] : memref<8x8x18xf32, #tpu.memory_space<vmem>>, vector<1x8x18xf32>
    %272 = vector.shape_cast %271 : vector<1x8x18xf32> to vector<8x18xf32>
    %273 = vector.shape_cast %270 : vector<8x18xf32> to vector<1x8x18xf32>
    tpu.vector_store %arg6[%c7, %c0_58, %c0_59], %273 {strides = array<i32>} : memref<8x8x18xf32, #tpu.memory_space<vmem>>, vector<1x8x18xf32>,
    %c0_60 = arith.constant 0 : index
    %c0_61 = arith.constant 0 : index
    %274 = vector.load %arg7[%c0_60, %c0_61] : memref<8x18xf32, #tpu.memory_space<vmem>>, vector<8x18xf32>
    tpu.vector_store %arg7[%c0_60, %c0_61], %270 {strides = array<i32>} : memref<8x18xf32, #tpu.memory_space<vmem>>, vector<8x18xf32>,
    return
  }
  func.func @transform_0(%arg0: i32) -> (i32, i32, i32) {
    %c0_i32 = arith.constant 0 : i32
    %c0_i32_0 = arith.constant 0 : i32
    %c0_i32_1 = arith.constant 0 : i32
    return %c0_i32, %arg0, %c0_i32_0 : i32, i32, i32
  }
  func.func @transform_1(%arg0: i32) -> (i32, i32) {
    %c0_i32 = arith.constant 0 : i32
    %c0_i32_0 = arith.constant 0 : i32
    %c0_i32_1 = arith.constant 0 : i32
    return %c0_i32, %c0_i32_0 : i32, i32
  }
  func.func @transform_2(%arg0: i32) -> (i32, i32) {
    %c0_i32 = arith.constant 0 : i32
    %c0_i32_0 = arith.constant 0 : i32
    %c0_i32_1 = arith.constant 0 : i32
    return %c0_i32, %c0_i32_0 : i32, i32
  }
  func.func @transform_3(%arg0: i32) -> (i32, i32) {
    %c0_i32 = arith.constant 0 : i32
    %c0_i32_0 = arith.constant 0 : i32
    %c0_i32_1 = arith.constant 0 : i32
    return %c0_i32, %c0_i32_0 : i32, i32
  }
  func.func @transform_4(%arg0: i32) -> (i32, i32) {
    %c0_i32 = arith.constant 0 : i32
    %c0_i32_0 = arith.constant 0 : i32
    %c0_i32_1 = arith.constant 0 : i32
    return %c0_i32, %c0_i32_0 : i32, i32
  }
  func.func @transform_5(%arg0: i32) -> (i32, i32, i32) {
    %c0_i32 = arith.constant 0 : i32
    %c0_i32_0 = arith.constant 0 : i32
    %c0_i32_1 = arith.constant 0 : i32
    return %c0_i32, %arg0, %c0_i32_0 : i32, i32, i32
  }
  func.func @transform_6(%arg0: i32) -> (i32, i32) {
    %c0_i32 = arith.constant 0 : i32
    %c0_i32_0 = arith.constant 0 : i32
    return %arg0, %c0_i32 : i32, i32
  }
}

</mosaic_0001>

<bundles_post_ra>
// kernel: tpu_custom_call.1
= control target key start
LH: loop header
LB: loop body
LE: loop exit
PB: predicated region body
PF: predicated region fallthrough
CT: control target
= control target key end

     0   :  { %12 = vsyncpa [#allocation3], 0  ;;  %s1773_s0 = inlined_call_operand.hbm [shape: f32[8,8,26], index: 0, kind: input, shape index: {}]   ;;  %s1774_s1 = inlined_call_operand.hbm [shape: f32[26,54], index: 1, kind: input, shape index: {}]   ;;  %s1775_s2 = inlined_call_operand.hbm [shape: f32[18,54], index: 2, kind: input, shape index: {}]   ;;  %s1776_s3 = inlined_call_operand.vmem [shape: f32[1,54], index: 3, kind: input, shape index: {}]   ;;  %s1777_s4 = inlined_call_operand.vmem [shape: f32[1,18], index: 4, kind: input, shape index: {}]   ;;  %s1778_s5 = inlined_call_operand.hbm [shape: f32[8,8,18], index: 5, kind: output, shape index: {0}]   ;;  %s1779_s6 = inlined_call_operand.hbm [shape: f32[8,18], index: 6, kind: output, shape index: {1}]  }
   0x1   :  { %13 = vsyncpa [#allocation6], 0 }
   0x2   :  { %14 = vsyncpa [#allocation4], 0 }
   0x3   :  { %15 = vsyncpa [#allocation10], 0  ;;  %s1491_s21 = smov [#allocation5]   ;;  %s1492_s23 = smov [#allocation2]  }
   0x4   :  { %s33_s22 = sshll.u32 %s1491_s21, 4  ;;  %s21_s24 = sshll.u32 %s1492_s23, 4  ;;  %s34_s22 = int_to_ptr.vmem [resolvable:$true] %s33_s22  ;;  %s1540_s24 = int_to_ptr.vmem [resolvable:$true] %s21_s24 }
   0x5   :  { %s1373_s27 = scalar_lea.hbm %s1774_s1, 512 }
   0x6   :  { %p1374_p0 = scmp.ne.s32.totalorder %s1774_s1, %s1373_s27  ;;  %p1377_p1 = scmp.lt.u32.totalorder %s1373_s27, %s1774_s1 }
   0x8   :  { %p1379_p2 = pnand %p1377_p1, %p1374_p0 }
   0xa   :  { %1382 = shalt.err (!%p1379_p2)
}
   0xb   :  { %s1383_s8 = scalar_lea.vmem %s34_s22, 512  ;;  %p1388_p4 = scmp.lt.s32.totalorder %s34_s22, %s34_s22 }
   0xc   :  { %p1384_p3 = scmp.ne.s32.totalorder %s34_s22, %s1383_s8  ;;  %p1389_p5 = scmp.lt.s32.totalorder %s1383_s8, %s1383_s8 }
   0xe   :  { %p1390_p6 = por %p1389_p5, %p1388_p4 }
  0x10   :  { %p1391_p7 = pnand %p1390_p6, %p1384_p3 }
  0x12   :  { %1394 = shalt.err (!%p1391_p7)
}
  0x13   :  { %s1493_s9 = smov 128   ;;  %s1494_s10 = smov 8  }
  0x14   :  { %39 = dma.hbm_to_vmem [thread:$0]  %s1774_s1, 512, %s34_s22, [#allocation6], %s1493_s9, %s1493_s9, %s1494_s10  }
  0x15   :  { %s1395_s15 = scalar_lea.hbm %s1773_s0, 1024 }
  0x16   :  { %p1396_p8 = scmp.ne.s32.totalorder %s1773_s0, %s1395_s15  ;;  %p1399_p9 = scmp.lt.u32.totalorder %s1395_s15, %s1773_s0 }
  0x18   :  { %p1401_p10 = pnand %p1399_p9, %p1396_p8 }
  0x1a   :  { %1404 = shalt.err (!%p1401_p10)
}
  0x1b   :  { %s1405_s20 = scalar_lea.vmem %s1540_s24, 1024  ;;  %p1410_p12 = scmp.lt.s32.totalorder %s1540_s24, %s1540_s24 }
  0x1c   :  { %p1406_p11 = scmp.ne.s32.totalorder %s1540_s24, %s1405_s20  ;;  %p1411_p13 = scmp.lt.s32.totalorder %s1405_s20, %s1405_s20 }
  0x1e   :  { %p1412_p0 = por %p1411_p13, %p1410_p12 }
  0x20   :  { %p1413_p1 = pnand %p1412_p0, %p1406_p11 }
  0x22   :  { %1416 = shalt.err (!%p1413_p1)
}
  0x23   :  { %27 = dma.hbm_to_vmem [thread:$0]  %s1773_s0, 1024, %s1540_s24, [#allocation3], %s1493_s9, %s1493_s9, %s1494_s10  }
  0x24   :  { %s1495_s22 = smov [#allocation7]   ;;  %s1417_s27 = scalar_lea.hbm %s1775_s2, 384 }
  0x25   :  { %s45_s23 = sshll.u32 %s1495_s22, 4  ;;  %p1418_p2 = scmp.ne.s32.totalorder %s1775_s2, %s1417_s27  ;;  %s46_s23 = int_to_ptr.vmem [resolvable:$true] %s45_s23 }
  0x26   :  { %p1421_p3 = scmp.lt.u32.totalorder %s1417_s27, %s1775_s2 }
  0x28   :  { %p1423_p4 = pnand %p1421_p3, %p1418_p2 }
  0x2a   :  { %1426 = shalt.err (!%p1423_p4)
}
  0x2b   :  { %s1427_s8 = scalar_lea.vmem %s46_s23, 384  ;;  %p1432_p6 = scmp.lt.s32.totalorder %s46_s23, %s46_s23 }
  0x2c   :  { %p1428_p5 = scmp.ne.s32.totalorder %s46_s23, %s1427_s8  ;;  %p1433_p7 = scmp.lt.s32.totalorder %s1427_s8, %s1427_s8 }
  0x2e   :  { %p1434_p8 = por %p1433_p7, %p1432_p6 }
  0x30   :  { %p1435_p9 = pnand %p1434_p8, %p1428_p5 }
  0x32   :  { %1438 = shalt.err (!%p1435_p9)
}
  0x33   :  { %51 = dma.hbm_to_vmem [thread:$0]  %s1775_s2, 384, %s46_s23, [#allocation6], %s1493_s9, %s1493_s9, %s1494_s10  }
  0x34   :  { %1483 = dma.done.wait [#allocation3], 1024  }
  0x35   :  { %1484 = vsyncadd [#allocation3], 4294966272 }
  0x36   :  { %1485 = dma.done.wait [#allocation6], 896  }
  0x37   :  { %1486 = vsyncadd [#allocation6], 4294966400  ;;  %v1496_v0 = vmov 0.0|0.0   ;;  %vm1497_vm0 = vmmov 0   ;;  %v1498_v1 = vmov 0.0   ;;  %vm109_vm1 = vcmask 1041408  }
  0x38   :  { %1287 = vmatprep.subr.bf16.mxu1 %v1496_v0  ;;  %1211 = vmatprep.mubr.msk.f32.mxu1 %vm1497_vm0, %v1498_v1  ;;  %v73_v2 = vld [vmem:[#allocation5] sm:$0xff]  ;;  %v74_v3 = vld [vmem:[#allocation5 + $0x8] sm:$0xff]  ;;  %vm84_vm2 = vcmask 211968   ;;  %v75_v7 = vld [vmem:[#allocation5 + $0x10] sm:$0xff]  ;;  %vm1499_vm3 = vmmov 1   ;;  %s1500_s12 = smov 36  }
  0x39   :  { %v218_v4 = vld [vmem:[#allocation7] sm:$0xff]  ;;  %v1277_v5 = vpack.c.bf16 %v74_v3, %v73_v2  ;;  %v219_v6 = vld [vmem:[#allocation7 + $0x8] sm:$0xff]  ;;  %v76_v8 = vld [vmem:[#allocation5 + $0x18] sm:$0x3]  ;;  %s1502_s15 = smov 110   ;;  %vm222_vm5 = vcmask 146432  }
  0x3a   :  { %v1595_v9 = vpack.c.bf16 %v219_v6, %v218_v4  ;;  %v1281_v10 = vpack.c.bf16 %v76_v8, %v75_v7  ;;  %vm1282_vm4 = vmpackc.low %vm109_vm1, %vm1499_vm3  ;;  %v65_v11 = vld [vmem:[#allocation2] sm:$0xff]  ;;  %v1604_v13 = vld [vmem:[#allocation7 + $0x10] sm:$0x3]  ;;  %s1504_s17 = smov [#allocation9]  }
  0x3b   :  { %1278 = vmatprep.subr.bf16.mxu0 %v1277_v5  ;;  %1193 = vmatprep.mubr.msk.f32.mxu0 %vm84_vm2, %v65_v11  ;;  %v1119_v12 = vld [vmem:[%s1777_s4] ss:$0 sm:$0xff]  ;;  %v66_v14 = vld [vmem:[#allocation2 + $0x8] sm:$0xff]  ;;  %s1501_s4 = smov 92   ;;  %v67_v52 = vld [vmem:[#allocation2 + $0x10] sm:$0xff]  ;;  %s1093_s18 = sshll.u32 %s1504_s17, 4  ;;  %s1094_s18 = int_to_ptr.vmem [resolvable:$true] %s1093_s18 }
  0x3c   :  { %1289 = vmatpush3.bf16.msra.mxu1 %v1595_v9  ;;  %1280 = vmatpush3.bf16.msra.mxu0 %v1277_v5  ;;  %v1632_v21 = vld [vmem:[%s1776_s3] ss:$0 sm:$0xff]  ;;  %v68_v53 = vld [vmem:[#allocation2 + $0x18] sm:$0xff]  ;;  %s1503_s3 = smov [#allocation8]  }
  0x3d   :  { %1209 = vmatprep.subr.mxu1 %v1498_v1  ;;  %1283 = vmatprep.subr.msk.bf16.mxu0 %vm1282_vm4, %v1281_v10  ;;  %s1080_s16 = sshll.u32 %s1503_s3, 4  ;;  %s1081_s16 = int_to_ptr.vmem [resolvable:$true] %s1080_s16 }
  0x3e   :  { %311 = vrot.lane.b32.xlu0 %v1119_v12, %s1500_s12  ;;  %s1439_s19 = scalar_lea.vmem %s1081_s16, 1024  ;;  %p1444_p11 = scmp.lt.s32.totalorder %s1081_s16, %s1081_s16 }
  0x3f   :  { %p1440_p10 = scmp.ne.s32.totalorder %s1081_s16, %s1439_s19  ;;  %p1445_p12 = scmp.lt.s32.totalorder %s1439_s19, %s1439_s19 }
  0x40   :  { %1210 = vmatpush3.msk.msra.mxu1 %vm109_vm1, %v1604_v13  ;;  %1286 = vmatpush3.bf16.msk.msra.mxu0 %vm1282_vm4, %v1281_v10 }
  0x41   :  { %1212 = vmatmul.mubr.f32.vlgmr.msra.gmra.mrb[0].mxu1 %v1498_v1  ;;  %1290 = vmatprep.subr.bf16.mxu1 %v1496_v0  ;;  %p1446_p13 = por %p1445_p12, %p1444_p11 }
  0x42   :  { %1292 = vmatpush3.bf16.msra.mxu1 %v1595_v9  ;;  %1220 = vmatprep.mubr.msk.f32.mxu1 %vm1497_vm0, %v1498_v1 }
  0x43   :  { %1194 = vmatmul.mubr.msk.f32.vlgmr.msra.gmra.mrb[0].mxu0 %vm84_vm2, %v66_v14  ;;  %1218 = vmatprep.subr.mxu1 %v1498_v1  ;;  %p1447_p0 = pnand %p1446_p13, %p1440_p10 }
  0x44   :  { %1296 = vmatprep.subr.bf16.mxu0 %v1496_v0  ;;  %1196 = vmatprep.mubr.msk.f32.mxu0 %vm84_vm2, %v67_v52 }
  0x45   :  { %1298 = vmatpush3.bf16.msra.mxu0 %v1595_v9 }
  0x46   :  { %1219 = vmatpush3.msk.msra.mxu1 %vm109_vm1, %v1604_v13  ;;  %1236 = vmatprep.subr.mxu0 %v1498_v1 }
  0x47   :  { %1293 = vmatprep.subr.bf16.mxu1 %v1496_v0  ;;  %1197 = vmatmul.mubr.msk.f32.gmra.mrb[2].mxu0 %vm84_vm2, %v68_v53 }
  0x49   :  { %1237 = vmatpush3.msk.msra.mxu0 %vm109_vm1, %v1604_v13 }
  0x4a   :  { %1302 = vmatprep.subr.bf16.mxu0 %v1496_v0 }
  0xb0   :  { %v1625_v15 = vpop.permute.xlu0 %311 }
 0x114   :  { %v295_v16 = vpop.f32.mrb[0].mxu1 }
 0x115   :  { %v314_v17 = vadd.f32 %v1625_v15, %v295_v16  ;;  %v1213_v18 = vpop.f32.mrb[1].mxu1 }
 0x116   :  { %v1195_v19 = vpop.f32.mrb[0].mxu0  ;;  %v70_v18 = vld [vmem:[#allocation2 + $0x28] sm:$0xff] }
 0x117   :  { %316 = vrot.lane.b32.xlu0 %v314_v17, %s1501_s4  ;;  %v179_v20 = vpop.f32.mrb[1].mxu0  ;;  %v185_v42 = vadd.f32 %v1195_v19, %v1632_v21  ;;  %v69_v17 = vld [vmem:[#allocation2 + $0x20] sm:$0xff]  ;;  %v71_v19 = vld [vmem:[#allocation2 + $0x30] sm:$0xff] }
 0x118   :  { %v180_v22 = vadd.f32 %v1632_v21, %v179_v20  ;;  %1199 = vmatprep.mubr.msk.f32.mxu0 %vm84_vm2, %v69_v17  ;;  %v72_v20 = vld [vmem:[#allocation2 + $0x38] sm:$0xff] }
 0x119   :  { %1200 = vmatmul.mubr.msk.f32.gmra.mrb[4].mxu0 %vm84_vm2, %v70_v18 }
 0x11a   :  { %v299_v23 = vadd.f32 %v295_v16, %v180_v22  ;;  %v1198_v60 = vpop.f32.mrb[2].mxu0  ;;  %1202 = vmatprep.mubr.msk.f32.mxu0 %vm84_vm2, %v71_v19 }
 0x11b   :  { %v189_v61 = vpop.f32.mrb[3].mxu0 }
 0x11c   :  { %v1118_v24 = vmul.f32 -1.442695, %v299_v23  ;;  %v190_v4 = vadd.f32 %v1632_v21, %v189_v61 }
 0x11d   :  { %1203 = vmatmul.mubr.msk.f32.gmra.mrb[6].mxu0 %vm84_vm2, %v72_v20 }
 0x11e   :  { %1325 = vpow2.f32 %v1118_v24  ;;  %1238 = vmatprep.mubr.msk.f32.mxu0 %vm1497_vm0, %v1498_v1 }
 0x128   :  { %v1326_v25 = vpop.eup %1325 }
 0x129   :  { %v303_v26 = vadd.f32 1.0, %v1326_v25 }
 0x12b   :  { %1327 = vrcp.f32 %v303_v26 }
 0x135   :  { %v1328_v27 = vpop.eup %1327 }
 0x136   :  { %v326_v33 = vsub.f32 1.0, %v1328_v27  ;;  %v332_v35 = vmul.f32 0.0, %v1328_v27 }
 0x189   :  { %v317_v28 = vpop.permute.xlu0 %316 }
 0x18a   :  { %v319_v29 = vmul.f32 %v1328_v27, %v317_v28 }
 0x18c   :  { %321 = vrot.lane.b32.xlu1 %v319_v29, %s1500_s12 }
 0x1ec   :  { %v1676_v28 = vpop.f32.mrb[4].mxu0 }
 0x1ed   :  { %v199_v29 = vpop.f32.mrb[5].mxu0 }
 0x1fe   :  { %v322_v30 = vpop.permute.xlu1 %321 }
 0x1ff   :  { %v324_v31 = vadd.f32 %v322_v30, %v180_v22  ;;  %v1678_v30 = vpop.f32.mrb[6].mxu0 }
 0x201   :  { %1329 = vtanh.f32 %v324_v31  ;;  %v1680_v31 = vpop.f32.mrb[7].mxu0 }
 0x20b   :  { %v1330_v32 = vpop.eup %1329 }
 0x20c   :  { %328 = vrot.lane.b32.xlu1 %v1330_v32, %s1502_s15 }
 0x27e   :  { %v329_v34 = vpop.permute.xlu1 %328 }
 0x27f   :  { %v331_v36 = vmul.f32 %v329_v34, %v326_v33 }
 0x281   :  { %v333_v37 = vadd.f32 %v332_v35, %v331_v36  ;;  %v195_v36 = vadd.f32 %v1198_v60, %v1632_v21 }
 0x283   :  { %335 = vrot.lane.b32.xlu0 %v333_v37, %s1502_s15 }
 0x2f5   :  { %v336_v38 = vpop.permute.xlu0 %335 }
 0x2f6   :  { %338 = vst.msk [vmem:[#allocation8] sm:$0xff] %vm222_vm5, %v336_v38  ;;  %1221 = vmatmul.mubr.msk.f32.vlgmr.msra.gmra.mrb[2].mxu1 %vm222_vm5, %v336_v38 }
 0x2f7   :  { %1295 = vmatpush3.bf16.msra.mxu1 %v1595_v9  ;;  %1229 = vmatprep.mubr.msk.f32.mxu1 %vm1497_vm0, %v1498_v1 }
 0x2f8   :  { %1227 = vmatprep.subr.mxu1 %v1498_v1 }
 0x2fb   :  { %1228 = vmatpush3.msk.msra.mxu1 %vm109_vm1, %v1604_v13 }
 0x2fc   :  { %1299 = vmatprep.subr.bf16.mxu1 %v1496_v0 }
 0x3c9   :  { %v407_v39 = vpop.f32.mrb[2].mxu1 }
 0x3ca   :  { %v418_v40 = vadd.f32 %v407_v39, %v1625_v15  ;;  %v1222_v41 = vpop.f32.mrb[3].mxu1  ;;  %v411_v43 = vadd.f32 %v407_v39, %v185_v42 }
 0x3cc   :  { %420 = vrot.lane.b32.xlu1 %v418_v40, %s1501_s4  ;;  %v1122_v44 = vmul.f32 -1.442695, %v411_v43 }
 0x3ce   :  { %1331 = vpow2.f32 %v1122_v44 }
 0x3d8   :  { %v1332_v45 = vpop.eup %1331 }
 0x3d9   :  { %v415_v46 = vadd.f32 1.0, %v1332_v45 }
 0x3db   :  { %1333 = vrcp.f32 %v415_v46 }
 0x3e5   :  { %v1334_v47 = vpop.eup %1333 }
 0x3e6   :  { %v430_v55 = vsub.f32 1.0, %v1334_v47  ;;  %v436_v57 = vmul.f32 %v1334_v47, %v333_v37 }
 0x43e   :  { %v421_v48 = vpop.permute.xlu1 %420 }
 0x43f   :  { %v423_v49 = vmul.f32 %v1334_v47, %v421_v48 }
 0x441   :  { %425 = vrot.lane.b32.xlu0 %v423_v49, %s1500_s12 }
 0x4b3   :  { %v426_v50 = vpop.permute.xlu0 %425 }
 0x4b4   :  { %v428_v51 = vadd.f32 %v426_v50, %v185_v42 }
 0x4b6   :  { %1335 = vtanh.f32 %v428_v51 }
 0x4c0   :  { %v1336_v54 = vpop.eup %1335 }
 0x4c1   :  { %432 = vrot.lane.b32.xlu1 %v1336_v54, %s1502_s15 }
 0x533   :  { %v433_v56 = vpop.permute.xlu1 %432 }
 0x534   :  { %v435_v58 = vmul.f32 %v433_v56, %v430_v55  ;;  %v200_v55 = vadd.f32 %v1632_v21, %v199_v29 }
 0x536   :  { %v437_v59 = vadd.f32 %v436_v57, %v435_v58 }
 0x538   :  { %439 = vrot.lane.b32.xlu0 %v437_v59, %s1502_s15 }
 0x5aa   :  { %v440_v62 = vpop.permute.xlu0 %439 }
 0x5ab   :  { %443 = vst.msk [vmem:[#allocation8 + $0x8] sm:$0xff] %vm222_vm5, %v440_v62  ;;  %1230 = vmatmul.mubr.msk.f32.vlgmr.msra.gmra.mrb[4].mxu1 %vm222_vm5, %v440_v62 }
 0x5ac   :  { %1301 = vmatpush3.bf16.msra.mxu1 %v1595_v9  ;;  %1247 = vmatprep.mubr.msk.f32.mxu1 %vm1497_vm0, %v1498_v1 }
 0x5ad   :  { %1245 = vmatprep.subr.mxu1 %v1498_v1 }
 0x5b0   :  { %1246 = vmatpush3.msk.msra.mxu1 %vm109_vm1, %v1604_v13 }
 0x5b1   :  { %1305 = vmatprep.subr.bf16.mxu1 %v1496_v0 }
 0x67e   :  { %v512_v63 = vpop.f32.mrb[4].mxu1 }
 0x67f   :  { %v523_v2 = vadd.f32 %v512_v63, %v1625_v15  ;;  %v1231_v3 = vpop.f32.mrb[5].mxu1  ;;  %v516_v5 = vadd.f32 %v512_v63, %v190_v4 }
 0x681   :  { %525 = vrot.lane.b32.xlu1 %v523_v2, %s1501_s4  ;;  %v1125_v6 = vmul.f32 -1.442695, %v516_v5 }
 0x683   :  { %1337 = vpow2.f32 %v1125_v6 }
 0x68d   :  { %v1338_v7 = vpop.eup %1337 }
 0x68e   :  { %v520_v8 = vadd.f32 1.0, %v1338_v7 }
 0x690   :  { %1339 = vrcp.f32 %v520_v8 }
 0x69a   :  { %v1340_v10 = vpop.eup %1339 }
 0x69b   :  { %v535_v23 = vsub.f32 1.0, %v1340_v10  ;;  %v541_v25 = vmul.f32 %v1340_v10, %v437_v59 }
 0x6f3   :  { %v526_v11 = vpop.permute.xlu1 %525 }
 0x6f4   :  { %v528_v12 = vmul.f32 %v1340_v10, %v526_v11 }
 0x6f6   :  { %530 = vrot.lane.b32.xlu0 %v528_v12, %s1500_s12 }
 0x768   :  { %v531_v14 = vpop.permute.xlu0 %530 }
 0x769   :  { %v533_v16 = vadd.f32 %v531_v14, %v190_v4 }
 0x76b   :  { %1341 = vtanh.f32 %v533_v16  ;;  %v205_v16 = vadd.f32 %v1676_v28, %v1632_v21 }
 0x775   :  { %v1342_v22 = vpop.eup %1341 }
 0x776   :  { %537 = vrot.lane.b32.xlu1 %v1342_v22, %s1502_s15 }
 0x7e8   :  { %v538_v24 = vpop.permute.xlu1 %537 }
 0x7e9   :  { %v540_v26 = vmul.f32 %v538_v24, %v535_v23 }
 0x7eb   :  { %v542_v27 = vadd.f32 %v541_v25, %v540_v26 }
 0x7ed   :  { %544 = vrot.lane.b32.xlu0 %v542_v27, %s1502_s15 }
 0x85f   :  { %v545_v32 = vpop.permute.xlu0 %544 }
 0x860   :  { %548 = vst.msk [vmem:[#allocation8 + $0x10] sm:$0xff] %vm222_vm5, %v545_v32  ;;  %1239 = vmatmul.mubr.msk.f32.vlgmr.msra.gmra.mrb[8].mxu0 %vm222_vm5, %v545_v32 }
 0x861   :  { %1304 = vmatpush3.bf16.msra.mxu0 %v1595_v9  ;;  %1256 = vmatprep.mubr.msk.f32.mxu0 %vm1497_vm0, %v1498_v1 }
 0x862   :  { %1254 = vmatprep.subr.mxu0 %v1498_v1 }
 0x865   :  { %1255 = vmatpush3.msk.msra.mxu0 %vm109_vm1, %v1604_v13 }
 0x866   :  { %1308 = vmatprep.subr.bf16.mxu0 %v1496_v0 }
 0x933   :  { %v617_v33 = vpop.f32.mrb[8].mxu0 }
 0x934   :  { %v628_v34 = vadd.f32 %v617_v33, %v1625_v15  ;;  %v1240_v35 = vpop.f32.mrb[9].mxu0  ;;  %v621_v37 = vadd.f32 %v617_v33, %v195_v36 }
 0x936   :  { %630 = vrot.lane.b32.xlu1 %v628_v34, %s1501_s4  ;;  %v1128_v38 = vmul.f32 -1.442695, %v621_v37 }
 0x938   :  { %1343 = vpow2.f32 %v1128_v38 }
 0x942   :  { %v1344_v39 = vpop.eup %1343 }
 0x943   :  { %v625_v40 = vadd.f32 1.0, %v1344_v39 }
 0x945   :  { %1345 = vrcp.f32 %v625_v40 }
 0x94f   :  { %v1346_v41 = vpop.eup %1345 }
 0x950   :  { %v640_v46 = vsub.f32 1.0, %v1346_v41  ;;  %v646_v48 = vmul.f32 %v1346_v41, %v542_v27 }
 0x9a8   :  { %v631_v42 = vpop.permute.xlu1 %630 }
 0x9a9   :  { %v633_v43 = vmul.f32 %v1346_v41, %v631_v42 }
 0x9ab   :  { %635 = vrot.lane.b32.xlu0 %v633_v43, %s1500_s12 }
 0xa1d   :  { %v636_v0 = vpop.permute.xlu0 %635 }
 0xa1e   :  { %v638_v44 = vadd.f32 %v636_v0, %v195_v36  ;;  %v210_v36 = vadd.f32 %v1632_v21, %v1680_v31 }
 0xa20   :  { %1347 = vtanh.f32 %v638_v44 }
 0xa2a   :  { %v1348_v45 = vpop.eup %1347 }
 0xa2b   :  { %642 = vrot.lane.b32.xlu1 %v1348_v45, %s1502_s15 }
 0xa9d   :  { %v643_v47 = vpop.permute.xlu1 %642 }
 0xa9e   :  { %v645_v49 = vmul.f32 %v643_v47, %v640_v46 }
 0xaa0   :  { %v647_v50 = vadd.f32 %v646_v48, %v645_v49 }
 0xaa2   :  { %649 = vrot.lane.b32.xlu0 %v647_v50, %s1502_s15 }
 0xb14   :  { %v650_v51 = vpop.permute.xlu0 %649 }
 0xb15   :  { %653 = vst.msk [vmem:[#allocation8 + $0x18] sm:$0xff] %vm222_vm5, %v650_v51  ;;  %1248 = vmatmul.mubr.msk.f32.vlgmr.msra.gmra.mrb[6].mxu1 %vm222_vm5, %v650_v51 }
 0xb16   :  { %1307 = vmatpush3.bf16.msra.mxu1 %v1595_v9  ;;  %1265 = vmatprep.mubr.msk.f32.mxu1 %vm1497_vm0, %v1498_v1 }
 0xb17   :  { %1263 = vmatprep.subr.mxu1 %v1498_v1 }
 0xb1a   :  { %1264 = vmatpush3.msk.msra.mxu1 %vm109_vm1, %v1604_v13 }
 0xbe8   :  { %v722_v52 = vpop.f32.mrb[6].mxu1 }
 0xbe9   :  { %v733_v53 = vadd.f32 %v722_v52, %v1625_v15  ;;  %v1249_v54 = vpop.f32.mrb[7].mxu1  ;;  %v726_v56 = vadd.f32 %v722_v52, %v200_v55 }
 0xbea   :  { %v215_v54 = vadd.f32 %v1678_v30, %v1632_v21 }
 0xbeb   :  { %735 = vrot.lane.b32.xlu1 %v733_v53, %s1501_s4  ;;  %v1131_v57 = vmul.f32 -1.442695, %v726_v56 }
 0xbed   :  { %1349 = vpow2.f32 %v1131_v57 }
 0xbf7   :  { %v1350_v58 = vpop.eup %1349 }
 0xbf8   :  { %v730_v59 = vadd.f32 1.0, %v1350_v58 }
 0xbfa   :  { %1351 = vrcp.f32 %v730_v59 }
 0xc04   :  { %v1352_v60 = vpop.eup %1351 }
 0xc05   :  { %v745_v4 = vsub.f32 1.0, %v1352_v60  ;;  %v751_v6 = vmul.f32 %v1352_v60, %v647_v50 }
 0xc5d   :  { %v736_v61 = vpop.permute.xlu1 %735 }
 0xc5e   :  { %v738_v62 = vmul.f32 %v1352_v60, %v736_v61 }
 0xc60   :  { %740 = vrot.lane.b32.xlu0 %v738_v62, %s1500_s12 }
 0xcd2   :  { %v741_v63 = vpop.permute.xlu0 %740 }
 0xcd3   :  { %v743_v2 = vadd.f32 %v741_v63, %v200_v55 }
 0xcd5   :  { %1353 = vtanh.f32 %v743_v2 }
 0xcdf   :  { %v1354_v3 = vpop.eup %1353 }
 0xce0   :  { %747 = vrot.lane.b32.xlu1 %v1354_v3, %s1502_s15 }
 0xd52   :  { %v748_v5 = vpop.permute.xlu1 %747 }
 0xd53   :  { %v750_v7 = vmul.f32 %v748_v5, %v745_v4 }
 0xd55   :  { %v752_v8 = vadd.f32 %v751_v6, %v750_v7 }
 0xd57   :  { %754 = vrot.lane.b32.xlu0 %v752_v8, %s1502_s15 }
 0xdc9   :  { %v755_v10 = vpop.permute.xlu0 %754 }
 0xdca   :  { %758 = vst.msk [vmem:[#allocation8 + $0x20] sm:$0xff] %vm222_vm5, %v755_v10  ;;  %1257 = vmatmul.mubr.msk.f32.vlgmr.msra.gmra.mrb[10].mxu0 %vm222_vm5, %v755_v10 }
 0xdcb   :  { %1310 = vmatpush3.bf16.msra.mxu0 %v1595_v9  ;;  %1274 = vmatprep.mubr.msk.f32.mxu0 %vm1497_vm0, %v1498_v1 }
 0xdcc   :  { %1272 = vmatprep.subr.mxu0 %v1498_v1 }
 0xdcf   :  { %1273 = vmatpush3.msk.msra.mxu0 %vm109_vm1, %v1604_v13 }
 0xe9d   :  { %v827_v11 = vpop.f32.mrb[10].mxu0 }
 0xe9e   :  { %v838_v12 = vadd.f32 %v827_v11, %v1625_v15  ;;  %v1258_v14 = vpop.f32.mrb[11].mxu0  ;;  %v831_v17 = vadd.f32 %v827_v11, %v205_v16 }
 0xea0   :  { %840 = vrot.lane.b32.xlu1 %v838_v12, %s1501_s4  ;;  %v1134_v18 = vmul.f32 -1.442695, %v831_v17 }
 0xea2   :  { %1355 = vpow2.f32 %v1134_v18 }
 0xeac   :  { %v1356_v9 = vpop.eup %1355 }
 0xead   :  { %v835_v19 = vadd.f32 1.0, %v1356_v9 }
 0xeaf   :  { %1357 = vrcp.f32 %v835_v19 }
 0xeb9   :  { %v1358_v20 = vpop.eup %1357 }
 0xeba   :  { %v850_v25 = vsub.f32 1.0, %v1358_v20  ;;  %v856_v27 = vmul.f32 %v1358_v20, %v752_v8 }
 0xf12   :  { %v841_v1 = vpop.permute.xlu1 %840 }
 0xf13   :  { %v843_v22 = vmul.f32 %v1358_v20, %v841_v1 }
 0xf15   :  { %845 = vrot.lane.b32.xlu0 %v843_v22, %s1500_s12 }
 0xf87   :  { %v846_v13 = vpop.permute.xlu0 %845 }
 0xf88   :  { %v848_v23 = vadd.f32 %v846_v13, %v205_v16 }
 0xf8a   :  { %1359 = vtanh.f32 %v848_v23 }
 0xf94   :  { %v1360_v24 = vpop.eup %1359 }
 0xf95   :  { %852 = vrot.lane.b32.xlu1 %v1360_v24, %s1502_s15 }
0x1007   :  { %v853_v26 = vpop.permute.xlu1 %852 }
0x1008   :  { %v855_v28 = vmul.f32 %v853_v26, %v850_v25 }
0x100a   :  { %v857_v29 = vadd.f32 %v856_v27, %v855_v28 }
0x100c   :  { %859 = vrot.lane.b32.xlu0 %v857_v29, %s1502_s15 }
0x107e   :  { %v860_v32 = vpop.permute.xlu0 %859 }
0x107f   :  { %863 = vst.msk [vmem:[#allocation8 + $0x28] sm:$0xff] %vm222_vm5, %v860_v32  ;;  %1266 = vmatmul.mubr.msk.f32.vlgmr.msra.gmra.mrb[8].mxu1 %vm222_vm5, %v860_v32 }
0x1152   :  { %v932_v33 = vpop.f32.mrb[8].mxu1 }
0x1153   :  { %v943_v34 = vadd.f32 %v932_v33, %v1625_v15  ;;  %v1267_v35 = vpop.f32.mrb[9].mxu1  ;;  %v936_v37 = vadd.f32 %v932_v33, %v210_v36 }
0x1155   :  { %945 = vrot.lane.b32.xlu1 %v943_v34, %s1501_s4  ;;  %v1137_v38 = vmul.f32 -1.442695, %v936_v37 }
0x1157   :  { %1361 = vpow2.f32 %v1137_v38 }
0x1161   :  { %v1362_v39 = vpop.eup %1361 }
0x1162   :  { %v940_v40 = vadd.f32 1.0, %v1362_v39 }
0x1164   :  { %1363 = vrcp.f32 %v940_v40 }
0x116e   :  { %v1364_v41 = vpop.eup %1363 }
0x116f   :  { %v955_v46 = vsub.f32 1.0, %v1364_v41  ;;  %v961_v31 = vmul.f32 %v1364_v41, %v857_v29 }
0x11c7   :  { %v946_v42 = vpop.permute.xlu1 %945 }
0x11c8   :  { %v948_v43 = vmul.f32 %v1364_v41, %v946_v42 }
0x11ca   :  { %950 = vrot.lane.b32.xlu0 %v948_v43, %s1500_s12 }
0x123c   :  { %v951_v0 = vpop.permute.xlu0 %950 }
0x123d   :  { %v953_v44 = vadd.f32 %v951_v0, %v210_v36 }
0x123f   :  { %1365 = vtanh.f32 %v953_v44 }
0x1249   :  { %v1366_v45 = vpop.eup %1365 }
0x124a   :  { %957 = vrot.lane.b32.xlu1 %v1366_v45, %s1502_s15 }
0x12bc   :  { %v958_v47 = vpop.permute.xlu1 %957 }
0x12bd   :  { %v960_v48 = vmul.f32 %v958_v47, %v955_v46 }
0x12bf   :  { %v962_v49 = vadd.f32 %v961_v31, %v960_v48 }
0x12c1   :  { %964 = vrot.lane.b32.xlu0 %v962_v49, %s1502_s15 }
0x1333   :  { %v965_v50 = vpop.permute.xlu0 %964 }
0x1334   :  { %968 = vst.msk [vmem:[#allocation8 + $0x30] sm:$0xff] %vm222_vm5, %v965_v50  ;;  %1275 = vmatmul.mubr.msk.f32.vlgmr.msra.gmra.mrb[12].mxu0 %vm222_vm5, %v965_v50 }
0x1407   :  { %v1037_v51 = vpop.f32.mrb[12].mxu0 }
0x1408   :  { %v1048_v52 = vadd.f32 %v1037_v51, %v1625_v15  ;;  %v1276_v53 = vpop.f32.mrb[13].mxu0  ;;  %v1041_v55 = vadd.f32 %v1037_v51, %v215_v54 }
0x140a   :  { %1050 = vrot.lane.b32.xlu1 %v1048_v52, %s1501_s4  ;;  %v1140_v56 = vmul.f32 -1.442695, %v1041_v55 }
0x140c   :  { %1367 = vpow2.f32 %v1140_v56 }
0x1416   :  { %v1368_v57 = vpop.eup %1367 }
0x1417   :  { %v1045_v58 = vadd.f32 1.0, %v1368_v57 }
0x1419   :  { %1369 = vrcp.f32 %v1045_v58 }
0x1423   :  { %v1370_v59 = vpop.eup %1369 }
0x1424   :  { %v1060_v2 = vsub.f32 1.0, %v1370_v59  ;;  %v1066_v21 = vmul.f32 %v1370_v59, %v962_v49 }
0x147c   :  { %v1051_v60 = vpop.permute.xlu1 %1050 }
0x147d   :  { %v1053_v61 = vmul.f32 %v1370_v59, %v1051_v60 }
0x147f   :  { %1055 = vrot.lane.b32.xlu0 %v1053_v61, %s1500_s12 }
0x14f1   :  { %v1056_v62 = vpop.permute.xlu0 %1055 }
0x14f2   :  { %v1058_v63 = vadd.f32 %v1056_v62, %v215_v54 }
0x14f4   :  { %1371 = vtanh.f32 %v1058_v63 }
0x14fe   :  { %v1372_v15 = vpop.eup %1371 }
0x14ff   :  { %1062 = vrot.lane.b32.xlu1 %v1372_v15, %s1502_s15 }
0x1571   :  { %v1063_v3 = vpop.permute.xlu1 %1062 }
0x1572   :  { %v1065_v30 = vmul.f32 %v1063_v3, %v1060_v2 }
0x1574   :  { %v1067_v4 = vadd.f32 %v1066_v21, %v1065_v30 }
0x1576   :  { %1069 = vrot.lane.b32.xlu0 %v1067_v4, %s1502_s15 }
0x15e8   :  { %v1070_v5 = vpop.permute.xlu0 %1069 }
0x15e9   :  { %1073 = vst.msk [vmem:[#allocation8 + $0x38] sm:$0xff] %vm222_vm5, %v1070_v5  ;;  %1074 = vst.msk [vmem:[#allocation9] sm:$0xff] %vm222_vm5, %v1070_v5 }
0x15ea   :  { %1450 = shalt.err (!%p1447_p0)
}
0x15eb   :  { %s1451_s21 = scalar_lea.hbm %s1778_s5, 1024 }
0x15ec   :  { %p1452_p1 = scmp.ne.s32.totalorder %s1778_s5, %s1451_s21  ;;  %p1455_p2 = scmp.lt.u32.totalorder %s1451_s21, %s1778_s5 }
0x15ee   :  { %p1457_p3 = pnand %p1455_p2, %p1452_p1 }
0x15f0   :  { %1460 = shalt.err (!%p1457_p3)
}
0x15f1   :  { %1086 = dma.vmem_to_hbm [thread:$0]  %s1081_s16, 1024, %s1778_s5, [#allocation4], %s1493_s9, %s1493_s9, %s1494_s10  }
0x15f2   :  { %s1461_s29 = scalar_lea.vmem %s1094_s18, 128  ;;  %p1466_p5 = scmp.lt.s32.totalorder %s1094_s18, %s1094_s18 }
0x15f3   :  { %p1462_p4 = scmp.ne.s32.totalorder %s1094_s18, %s1461_s29  ;;  %p1467_p6 = scmp.lt.s32.totalorder %s1461_s29, %s1461_s29 }
0x15f5   :  { %p1468_p7 = por %p1467_p6, %p1466_p5 }
0x15f7   :  { %p1469_p8 = pnand %p1468_p7, %p1462_p4 }
0x15f9   :  { %1472 = shalt.err (!%p1469_p8)
}
0x15fa   :  { %s1473_s8 = scalar_lea.hbm %s1779_s6, 128 }
0x15fb   :  { %p1474_p9 = scmp.ne.s32.totalorder %s1779_s6, %s1473_s8  ;;  %p1477_p10 = scmp.lt.u32.totalorder %s1473_s8, %s1779_s6 }
0x15fd   :  { %p1479_p11 = pnand %p1477_p10, %p1474_p9 }
0x15ff   :  { %1482 = shalt.err (!%p1479_p11)
}
0x1600   :  { %1096 = dma.vmem_to_hbm [thread:$0]  %s1094_s18, 128, %s1779_s6, [#allocation10]  }
0x1601   :  { %1487 = dma.done.wait [#allocation4], 1024  }
0x1602   :  { %1488 = vsyncadd [#allocation4], 4294966272 }
0x1603   :  { %1489 = dma.done.wait [#allocation10], 128  }
0x1604   :  { %1490 = vsyncadd [#allocation10], 4294967168 }
0x1605   :  { %1103 = vsyncpa [#allocation3], 1 }
0x1606   :  { %1104 = vsyncpa [#allocation6], 1 }
0x1607   :  { %1105 = vsyncpa [#allocation4], 1 }
0x1608   :  { %1106 = vsyncpa [#allocation10], 1 }

</bundles_post_ra>
